<compile_context>
chip_gen: v6e
topology: v6e:2x2x1
jax: 0.10.0
libtpu: 0.0.40
codegen_flags: <defaults>
</compile_context>

<pallas_src>
import math

import jax
import jax.numpy as jnp
from jax.experimental import pallas as pl
from jax.experimental.pallas import tpu as pltpu


# ----------------------------------------------------------------------------
# Kernels
# ----------------------------------------------------------------------------

def _biaffine_kernel(x1_ref, x2_ref, w2c_ref, w2r_ref, u1_ref, s_ref, c_ref,
                     out_ref):
    """Fast path.

    x1_ref : (TN, D1)      x2_ref : (TN, D2)
    w2c_ref: (D1, O*D2)    w2c[d, o*D2+e] = W[o, d, e]
    w2r_ref: (1,  O*D2)    w2r[o*D2+e]    = W[o, D1, e]   (x1's constant-1 feature)
    u1_ref : (D1, O)       u1[d, o]       = W[o, d, D2]   (x2's constant-1 feature)
    s_ref  : (O*D2, O)     0/1 group-sum matrix
    c_ref  : (1, O)        W[:, D1, D2] + bias
    out_ref: (O, TN)       transposed (lane-dense) output block
    """
    x1 = x1_ref[...]
    x2 = x2_ref[...]
    n_out = out_ref.shape[0]
    # Per-channel x1-side projections; the x2-linear term rides along via the
    # broadcast row add (it gets multiplied by x2 and group-summed below).
    a = jnp.dot(x1, w2c_ref[...], preferred_element_type=jnp.float32) + w2r_ref[...]
    # Lane-tiled broadcast of x2 across the O channel groups (VPU/XLU copy,
    # replaces the old identity-tile MXU matmul).
    b = jnp.tile(x2, (1, n_out))
    # Group-sum over e per output channel + x1-linear term + folded constants.
    out = (jnp.dot(a * b, s_ref[...], preferred_element_type=jnp.float32)
           + jnp.dot(x1, u1_ref[...], preferred_element_type=jnp.float32)
           + c_ref[...])
    # Lane-dense store: (TN, O) -> (O, TN) so writes are full, unmasked vregs.
    out_ref[...] = out.T.astype(out_ref.dtype)


def _biaffine_kernel_compat(x1_ref, x2_ref, w2c_ref, w2r_ref, u1_ref, r_ref,
                            s_ref, c_ref, out_ref):
    """Portability fallback: identical math, but the x2 lane replication is a
    matmul against a 0/1 matrix and the output is stored untransposed (only
    used if the fast path fails to lower on the installed jax/Mosaic)."""
    x1 = x1_ref[...]
    a = jnp.dot(x1, w2c_ref[...], preferred_element_type=jnp.float32) + w2r_ref[...]
    b = jnp.dot(x2_ref[...], r_ref[...], preferred_element_type=jnp.float32)
    out = (jnp.dot(a * b, s_ref[...], preferred_element_type=jnp.float32)
           + jnp.dot(x1, u1_ref[...], preferred_element_type=jnp.float32)
           + c_ref[...])
    out_ref[...] = out.astype(out_ref.dtype)


# ----------------------------------------------------------------------------
# Parameter packing / tiling heuristics
# ----------------------------------------------------------------------------

def prepare_biaffine_params(W, bias, dtype=jnp.float32):
    """One-time repack of the nn.Bilinear weights into kernel operands.

    Cache the result across forward calls to avoid re-streaming W through HBM
    (transpose + reshape) on every call.
    """
    n_out, d1p, d2p = W.shape
    d1, d2 = d1p - 1, d2p - 1
    Wf = jnp.asarray(W, dtype)
    w2core = jnp.transpose(Wf[:, :d1, :d2], (1, 0, 2)).reshape(d1, n_out * d2)
    w2row = Wf[:, d1, :d2].reshape(1, n_out * d2)
    u1 = jnp.transpose(Wf[:, :d1, d2], (1, 0))
    c = (Wf[:, d1, d2] + jnp.asarray(bias, dtype)).reshape(1, n_out)
    s = jnp.repeat(jnp.eye(n_out, dtype=dtype), d2, axis=0)   # (O*D2, O)
    return dict(w2core=w2core, w2row=w2row, u1=u1, s=s, c=c,
                d1=d1, d2=d2, n_out=n_out)


def _pick_row_tile(n_rows, d1, d2, n_out, budget_bytes=12 << 20, cap=2048):
    # Small row counts: one block whose dims equal the full array dims (no
    # divisibility constraints, no masking, single grid step).
    if n_rows <= 512:
        return max(n_rows, 1)
    # Otherwise size the row tile against a VMEM budget (double-buffered input
    # and output tiles + the (TN, O*D2) f32 intermediates); multiple of 128 so
    # the transposed output block stays lane-aligned.
    per_row = 4 * (2 * (d1 + d2 + n_out) + 3 * n_out * d2 + 4 * n_out)
    t = max(256, min(cap, budget_bytes // max(per_row, 1)))
    t = (t // 128) * 128
    return min(t, pl.cdiv(n_rows, 128) * 128)


def _vmem_limit_bytes(tn, d1, d2, n_out):
    w = n_out * d2
    weights = 4 * (d1 * w + w + d1 * n_out + w * n_out + n_out + d2 * w)
    per_row = 4 * (2 * (d1 + d2 + n_out) + 3 * w + 4 * n_out)
    est = weights + tn * per_row
    # Raise the scoped VMEM limit (v5e default is only 16 MiB) but stay well
    # under v7x's 64 MiB physical per-TensorCore VMEM (weights are duplicated
    # per TC when the row axis is sharded across the two v7x cores).
    return int(min(48 << 20, max(32 << 20, 2 * est)))


def _const_spec(shape, single_buffer):
    if single_buffer:
        try:
            # Constant operands: the block index never changes, so a single
            # buffer suffices (halves their VMEM footprint vs. the default
            # double-buffering).
            return pl.BlockSpec(shape, lambda i: (0, 0),
                                pipeline_mode=pl.Buffered(1))
        except (TypeError, AttributeError):
            pass  # jax without BlockSpec.pipeline_mode support
    return pl.BlockSpec(shape, lambda i: (0, 0))


# ----------------------------------------------------------------------------
# Forward wrappers
# ----------------------------------------------------------------------------

def _forward_fast(x1f, x2f, p, tn):
    d1, d2, n_out = p["d1"], p["d2"], p["n_out"]
    n_rows = x1f.shape[0]
    w = n_out * d2
    out_t = pl.pallas_call(
        _biaffine_kernel,
        out_shape=jax.ShapeDtypeStruct((n_out, n_rows), x1f.dtype),
        grid_spec=pltpu.PrefetchScalarGridSpec(
            num_scalar_prefetch=0,
            grid=(pl.cdiv(n_rows, tn),),
            in_specs=[
                pl.BlockSpec((tn, d1), lambda i: (i, 0)),
                pl.BlockSpec((tn, d2), lambda i: (i, 0)),
                _const_spec((d1, w), True),
                _const_spec((1, w), True),
                _const_spec((d1, n_out), True),
                _const_spec((w, n_out), True),
                _const_spec((1, n_out), True),
            ],
            out_specs=pl.BlockSpec((n_out, tn), lambda i: (0, i)),
        ),
        compiler_params=pltpu.CompilerParams(
            dimension_semantics=("parallel",),
            vmem_limit_bytes=_vmem_limit_bytes(tn, d1, d2, n_out),
        ),
    )(x1f, x2f, p["w2core"], p["w2row"], p["u1"], p["s"], p["c"])
    return out_t.T   # (n_rows, n_out); cheap layout plumbing outside the kernel


def _forward_compat(x1f, x2f, p, tn):
    d1, d2, n_out = p["d1"], p["d2"], p["n_out"]
    n_rows = x1f.shape[0]
    w = n_out * d2
    r = jnp.tile(jnp.eye(d2, dtype=p["w2core"].dtype), (1, n_out))  # (D2, O*D2)
    return pl.pallas_call(
        _biaffine_kernel_compat,
        out_shape=jax.ShapeDtypeStruct((n_rows, n_out), x1f.dtype),
        grid_spec=pltpu.PrefetchScalarGridSpec(
            num_scalar_prefetch=0,
            grid=(pl.cdiv(n_rows, tn),),
            in_specs=[
                pl.BlockSpec((tn, d1), lambda i: (i, 0)),
                pl.BlockSpec((tn, d2), lambda i: (i, 0)),
                _const_spec((d1, w), False),
                _const_spec((1, w), False),
                _const_spec((d1, n_out), False),
                _const_spec((d2, w), False),
                _const_spec((w, n_out), False),
                _const_spec((1, n_out), False),
            ],
            out_specs=pl.BlockSpec((tn, n_out), lambda i: (i, 0)),
        ),
        compiler_params=pltpu.CompilerParams(
            dimension_semantics=("parallel",),
            vmem_limit_bytes=_vmem_limit_bytes(tn, d1, d2, n_out),
        ),
    )(x1f, x2f, p["w2core"], p["w2row"], p["u1"], r, p["s"], p["c"])


def biaffine_scorer(x1, x2, W=None, bias=None, *, params=None, tn=None):
    """BiaffineScorer.forward for arbitrary leading dims.

    Pass either the raw nn.Bilinear weights (W, bias), or
    params=prepare_biaffine_params(W, bias) (preferred when calling repeatedly
    so the weight repack happens once, not per call).
    """
    if params is None:
        params = prepare_biaffine_params(W, bias)
    d1, d2, n_out = params["d1"], params["d2"], params["n_out"]
    lead = x1.shape[:-1]
    assert x2.shape[:-1] == lead
    assert x1.shape[-1] == d1 and x2.shape[-1] == d2

    n_rows = math.prod(lead) if lead else 1
    if n_rows == 0:
        return jnp.zeros((*lead, n_out), x1.dtype)
    x1f = x1.reshape(n_rows, d1)
    x2f = x2.reshape(n_rows, d2)

    tn_eff = tn if tn is not None else _pick_row_tile(n_rows, d1, d2, n_out)

    try:
        out = jax.block_until_ready(_forward_fast(x1f, x2f, params, tn_eff))
    except Exception:
        # Fallback if the fast path fails to lower (e.g. jnp.tile / in-kernel
        # transpose / pl.Buffered unavailable in the installed Mosaic).
        out = _forward_compat(x1f, x2f, params, tn_eff)

    return out.reshape(*lead, n_out)


# ----------------------------------------------------------------------------
# Reference + self-test
# ----------------------------------------------------------------------------

def _reference(x1, x2, W, bias):
    lead = x1.shape[:-1]
    x1a = jnp.concatenate([x1, jnp.ones(lead + (1,), x1.dtype)], axis=-1)
    x2a = jnp.concatenate([x2, jnp.ones(lead + (1,), x2.dtype)], axis=-1)
    return jnp.einsum('...d,ode,...e->...o', x1a, W, x2a) + bias


if __name__ == "__main__":
    # Module config (synthetic, deterministic init — mirrors nn.init.normal_)
    input1_size, input2_size, output_size = 32, 32, 8
    batch, seq = 2, 8

    key = jax.random.PRNGKey(0)
    k_w, k_b, k_x1, k_x2 = jax.random.split(key, 4)

    W = jax.random.normal(
        k_w, (output_size, input1_size + 1, input2_size + 1), jnp.float32)
    bias = jax.random.normal(k_b, (output_size,), jnp.float32)

    x1 = jax.random.normal(k_x1, (batch, seq, input1_size), jnp.float32)
    x2 = jax.random.normal(k_x2, (batch, seq, input2_size), jnp.float32)

    params = prepare_biaffine_params(W, bias)   # one-time repack, reusable
    out = jax.block_until_ready(biaffine_scorer(x1, x2, params=params))

    ref = _reference(x1, x2, W, bias)
    assert out.shape == (batch, seq, output_size)
    assert jnp.allclose(out, ref, atol=1e-3, rtol=1e-3), float(
        jnp.max(jnp.abs(out - ref)))

    print("KERNEL_OK")
</pallas_src>

<mosaic_0001>
module attributes {stable_mosaic.version = 11 : i64} {
  func.func @_biaffine_kernel(%arg0: i32, %arg1: memref<16x32xf32, #tpu.memory_space<vmem>>, %arg2: memref<16x32xf32, #tpu.memory_space<vmem>>, %arg3: memref<32x256xf32, #tpu.memory_space<vmem>>, %arg4: memref<1x256xf32, #tpu.memory_space<vmem>>, %arg5: memref<32x8xf32, #tpu.memory_space<vmem>>, %arg6: memref<256x8xf32, #tpu.memory_space<vmem>>, %arg7: memref<1x8xf32, #tpu.memory_space<vmem>>, %arg8: memref<8x16xf32, #tpu.memory_space<vmem>>) attributes {dimension_semantics = [#tpu.dimension_semantics<parallel>], iteration_bounds = array<i64: 1>, scalar_prefetch = 0 : i64, scratch_operands = 0 : i64, tpu.core_type = #tpu.core_type<tc>, window_params = [{transform_indices = @transform_0, window_bounds = array<i64: 16, 32>}, {transform_indices = @transform_1, window_bounds = array<i64: 16, 32>}, {pipeline_mode = #tpu.pipeline_mode<synchronous>, transform_indices = @transform_2, window_bounds = array<i64: 32, 256>}, {pipeline_mode = #tpu.pipeline_mode<synchronous>, transform_indices = @transform_3, window_bounds = array<i64: 1, 256>}, {pipeline_mode = #tpu.pipeline_mode<synchronous>, transform_indices = @transform_4, window_bounds = array<i64: 32, 8>}, {pipeline_mode = #tpu.pipeline_mode<synchronous>, transform_indices = @transform_5, window_bounds = array<i64: 256, 8>}, {pipeline_mode = #tpu.pipeline_mode<synchronous>, transform_indices = @transform_6, window_bounds = array<i64: 1, 8>}, {transform_indices = @transform_7, window_bounds = array<i64: 8, 16>}]} {
    %c0 = arith.constant 0 : index
    %c0_0 = arith.constant 0 : index
    %0 = vector.load %arg1[%c0, %c0_0] : memref<16x32xf32, #tpu.memory_space<vmem>>, vector<16x32xf32>
    %c0_1 = arith.constant 0 : index
    %c0_2 = arith.constant 0 : index
    %1 = vector.load %arg2[%c0_1, %c0_2] : memref<16x32xf32, #tpu.memory_space<vmem>>, vector<16x32xf32>
    %c0_3 = arith.constant 0 : index
    %c0_4 = arith.constant 0 : index
    %2 = vector.load %arg3[%c0_3, %c0_4] : memref<32x256xf32, #tpu.memory_space<vmem>>, vector<32x256xf32>
    %cst = arith.constant dense<0.000000e+00> : vector<16x256xf32>
    %3 = tpu.matmul %0, %2, %cst {dimension_numbers = #tpu.dot_dimension_numbers<[1], [0], [0], [1], [0, 0, 1, 1], [], []>} : vector<16x32xf32>, vector<32x256xf32>, vector<16x256xf32> -> vector<16x256xf32>
    %c0_5 = arith.constant 0 : index
    %c0_6 = arith.constant 0 : index
    %4 = vector.load %arg4[%c0_5, %c0_6] : memref<1x256xf32, #tpu.memory_space<vmem>>, vector<1x256xf32>
    %5 = vector.broadcast %4 : vector<1x256xf32> to vector<16x256xf32>
    %6 = arith.addf %3, %5 : vector<16x256xf32>
    %7 = tpu.concatenate %1, %1, %1, %1, %1, %1, %1, %1 in 1 : vector<16x32xf32>, vector<16x32xf32>, vector<16x32xf32>, vector<16x32xf32>, vector<16x32xf32>, vector<16x32xf32>, vector<16x32xf32>, vector<16x32xf32> -> vector<16x256xf32>
    %8 = arith.mulf %6, %7 : vector<16x256xf32>
    %c0_7 = arith.constant 0 : index
    %c0_8 = arith.constant 0 : index
    %9 = vector.load %arg6[%c0_7, %c0_8] : memref<256x8xf32, #tpu.memory_space<vmem>>, vector<256x8xf32>
    %cst_9 = arith.constant dense<0.000000e+00> : vector<16x8xf32>
    %10 = tpu.matmul %8, %9, %cst_9 {dimension_numbers = #tpu.dot_dimension_numbers<[1], [0], [0], [1], [0, 0, 1, 1], [], []>} : vector<16x256xf32>, vector<256x8xf32>, vector<16x8xf32> -> vector<16x8xf32>
    %c0_10 = arith.constant 0 : index
    %c0_11 = arith.constant 0 : index
    %11 = vector.load %arg5[%c0_10, %c0_11] : memref<32x8xf32, #tpu.memory_space<vmem>>, vector<32x8xf32>
    %cst_12 = arith.constant dense<0.000000e+00> : vector<16x8xf32>
    %12 = tpu.matmul %0, %11, %cst_12 {dimension_numbers = #tpu.dot_dimension_numbers<[1], [0], [0], [1], [0, 0, 1, 1], [], []>} : vector<16x32xf32>, vector<32x8xf32>, vector<16x8xf32> -> vector<16x8xf32>
    %13 = arith.addf %10, %12 : vector<16x8xf32>
    %c0_13 = arith.constant 0 : index
    %c0_14 = arith.constant 0 : index
    %14 = vector.load %arg7[%c0_13, %c0_14] : memref<1x8xf32, #tpu.memory_space<vmem>>, vector<1x8xf32>
    %15 = vector.broadcast %14 : vector<1x8xf32> to vector<16x8xf32>
    %16 = arith.addf %13, %15 : vector<16x8xf32>
    %17 = tpu.transpose %16, [1, 0] : vector<16x8xf32> -> vector<8x16xf32>
    %c0_15 = arith.constant 0 : index
    %c0_16 = arith.constant 0 : index
    %18 = vector.load %arg8[%c0_15, %c0_16] : memref<8x16xf32, #tpu.memory_space<vmem>>, vector<8x16xf32>
    tpu.vector_store %arg8[%c0_15, %c0_16], %17 {strides = array<i32>} : memref<8x16xf32, #tpu.memory_space<vmem>>, vector<8x16xf32>,
    return
  }
  func.func @transform_0(%arg0: i32) -> (i32, i32) {
    %c0_i32 = arith.constant 0 : i32
    %c0_i32_0 = arith.constant 0 : i32
    return %arg0, %c0_i32 : i32, i32
  }
  func.func @transform_1(%arg0: i32) -> (i32, i32) {
    %c0_i32 = arith.constant 0 : i32
    %c0_i32_0 = arith.constant 0 : i32
    return %arg0, %c0_i32 : i32, i32
  }
  func.func @transform_2(%arg0: i32) -> (i32, i32) {
    %c0_i32 = arith.constant 0 : i32
    %c0_i32_0 = arith.constant 0 : i32
    %c0_i32_1 = arith.constant 0 : i32
    return %c0_i32, %c0_i32_0 : i32, i32
  }
  func.func @transform_3(%arg0: i32) -> (i32, i32) {
    %c0_i32 = arith.constant 0 : i32
    %c0_i32_0 = arith.constant 0 : i32
    %c0_i32_1 = arith.constant 0 : i32
    return %c0_i32, %c0_i32_0 : i32, i32
  }
  func.func @transform_4(%arg0: i32) -> (i32, i32) {
    %c0_i32 = arith.constant 0 : i32
    %c0_i32_0 = arith.constant 0 : i32
    %c0_i32_1 = arith.constant 0 : i32
    return %c0_i32, %c0_i32_0 : i32, i32
  }
  func.func @transform_5(%arg0: i32) -> (i32, i32) {
    %c0_i32 = arith.constant 0 : i32
    %c0_i32_0 = arith.constant 0 : i32
    %c0_i32_1 = arith.constant 0 : i32
    return %c0_i32, %c0_i32_0 : i32, i32
  }
  func.func @transform_6(%arg0: i32) -> (i32, i32) {
    %c0_i32 = arith.constant 0 : i32
    %c0_i32_0 = arith.constant 0 : i32
    %c0_i32_1 = arith.constant 0 : i32
    return %c0_i32, %c0_i32_0 : i32, i32
  }
  func.func @transform_7(%arg0: i32) -> (i32, i32) {
    %c0_i32 = arith.constant 0 : i32
    %c0_i32_0 = arith.constant 0 : i32
    return %c0_i32, %arg0 : i32, i32
  }
}

module attributes {stable_mosaic.version = 11 : i64} {
  func.func @_biaffine_kernel_compat(%arg0: i32, %arg1: memref<16x32xf32, #tpu.memory_space<vmem>>, %arg2: memref<16x32xf32, #tpu.memory_space<vmem>>, %arg3: memref<32x256xf32, #tpu.memory_space<vmem>>, %arg4: memref<1x256xf32, #tpu.memory_space<vmem>>, %arg5: memref<32x8xf32, #tpu.memory_space<vmem>>, %arg6: memref<32x256xf32, #tpu.memory_space<vmem>>, %arg7: memref<256x8xf32, #tpu.memory_space<vmem>>, %arg8: memref<1x8xf32, #tpu.memory_space<vmem>>, %arg9: memref<16x8xf32, #tpu.memory_space<vmem>>) attributes {dimension_semantics = [#tpu.dimension_semantics<parallel>], iteration_bounds = array<i64: 1>, scalar_prefetch = 0 : i64, scratch_operands = 0 : i64, tpu.core_type = #tpu.core_type<tc>, window_params = [{transform_indices = @transform_0, window_bounds = array<i64: 16, 32>}, {transform_indices = @transform_1, window_bounds = array<i64: 16, 32>}, {pipeline_mode = #tpu.pipeline_mode<synchronous>, transform_indices = @transform_2, window_bounds = array<i64: 32, 256>}, {pipeline_mode = #tpu.pipeline_mode<synchronous>, transform_indices = @transform_3, window_bounds = array<i64: 1, 256>}, {pipeline_mode = #tpu.pipeline_mode<synchronous>, transform_indices = @transform_4, window_bounds = array<i64: 32, 8>}, {pipeline_mode = #tpu.pipeline_mode<synchronous>, transform_indices = @transform_5, window_bounds = array<i64: 32, 256>}, {pipeline_mode = #tpu.pipeline_mode<synchronous>, transform_indices = @transform_6, window_bounds = array<i64: 256, 8>}, {pipeline_mode = #tpu.pipeline_mode<synchronous>, transform_indices = @transform_7, window_bounds = array<i64: 1, 8>}, {transform_indices = @transform_8, window_bounds = array<i64: 16, 8>}]} {
    %c0 = arith.constant 0 : index
    %c0_0 = arith.constant 0 : index
    %0 = vector.load %arg1[%c0, %c0_0] : memref<16x32xf32, #tpu.memory_space<vmem>>, vector<16x32xf32>
    %c0_1 = arith.constant 0 : index
    %c0_2 = arith.constant 0 : index
    %1 = vector.load %arg3[%c0_1, %c0_2] : memref<32x256xf32, #tpu.memory_space<vmem>>, vector<32x256xf32>
    %cst = arith.constant dense<0.000000e+00> : vector<16x256xf32>
    %2 = tpu.matmul %0, %1, %cst {dimension_numbers = #tpu.dot_dimension_numbers<[1], [0], [0], [1], [0, 0, 1, 1], [], []>} : vector<16x32xf32>, vector<32x256xf32>, vector<16x256xf32> -> vector<16x256xf32>
    %c0_3 = arith.constant 0 : index
    %c0_4 = arith.constant 0 : index
    %3 = vector.load %arg4[%c0_3, %c0_4] : memref<1x256xf32, #tpu.memory_space<vmem>>, vector<1x256xf32>
    %4 = vector.broadcast %3 : vector<1x256xf32> to vector<16x256xf32>
    %5 = arith.addf %2, %4 : vector<16x256xf32>
    %c0_5 = arith.constant 0 : index
    %c0_6 = arith.constant 0 : index
    %6 = vector.load %arg2[%c0_5, %c0_6] : memref<16x32xf32, #tpu.memory_space<vmem>>, vector<16x32xf32>
    %c0_7 = arith.constant 0 : index
    %c0_8 = arith.constant 0 : index
    %7 = vector.load %arg6[%c0_7, %c0_8] : memref<32x256xf32, #tpu.memory_space<vmem>>, vector<32x256xf32>
    %cst_9 = arith.constant dense<0.000000e+00> : vector<16x256xf32>
    %8 = tpu.matmul %6, %7, %cst_9 {dimension_numbers = #tpu.dot_dimension_numbers<[1], [0], [0], [1], [0, 0, 1, 1], [], []>} : vector<16x32xf32>, vector<32x256xf32>, vector<16x256xf32> -> vector<16x256xf32>
    %9 = arith.mulf %5, %8 : vector<16x256xf32>
    %c0_10 = arith.constant 0 : index
    %c0_11 = arith.constant 0 : index
    %10 = vector.load %arg7[%c0_10, %c0_11] : memref<256x8xf32, #tpu.memory_space<vmem>>, vector<256x8xf32>
    %cst_12 = arith.constant dense<0.000000e+00> : vector<16x8xf32>
    %11 = tpu.matmul %9, %10, %cst_12 {dimension_numbers = #tpu.dot_dimension_numbers<[1], [0], [0], [1], [0, 0, 1, 1], [], []>} : vector<16x256xf32>, vector<256x8xf32>, vector<16x8xf32> -> vector<16x8xf32>
    %c0_13 = arith.constant 0 : index
    %c0_14 = arith.constant 0 : index
    %12 = vector.load %arg5[%c0_13, %c0_14] : memref<32x8xf32, #tpu.memory_space<vmem>>, vector<32x8xf32>
    %cst_15 = arith.constant dense<0.000000e+00> : vector<16x8xf32>
    %13 = tpu.matmul %0, %12, %cst_15 {dimension_numbers = #tpu.dot_dimension_numbers<[1], [0], [0], [1], [0, 0, 1, 1], [], []>} : vector<16x32xf32>, vector<32x8xf32>, vector<16x8xf32> -> vector<16x8xf32>
    %14 = arith.addf %11, %13 : vector<16x8xf32>
    %c0_16 = arith.constant 0 : index
    %c0_17 = arith.constant 0 : index
    %15 = vector.load %arg8[%c0_16, %c0_17] : memref<1x8xf32, #tpu.memory_space<vmem>>, vector<1x8xf32>
    %16 = vector.broadcast %15 : vector<1x8xf32> to vector<16x8xf32>
    %17 = arith.addf %14, %16 : vector<16x8xf32>
    %c0_18 = arith.constant 0 : index
    %c0_19 = arith.constant 0 : index
    %18 = vector.load %arg9[%c0_18, %c0_19] : memref<16x8xf32, #tpu.memory_space<vmem>>, vector<16x8xf32>
    tpu.vector_store %arg9[%c0_18, %c0_19], %17 {strides = array<i32>} : memref<16x8xf32, #tpu.memory_space<vmem>>, vector<16x8xf32>,
    return
  }
  func.func @transform_0(%arg0: i32) -> (i32, i32) {
    %c0_i32 = arith.constant 0 : i32
    %c0_i32_0 = arith.constant 0 : i32
    return %arg0, %c0_i32 : i32, i32
  }
  func.func @transform_1(%arg0: i32) -> (i32, i32) {
    %c0_i32 = arith.constant 0 : i32
    %c0_i32_0 = arith.constant 0 : i32
    return %arg0, %c0_i32 : i32, i32
  }
  func.func @transform_2(%arg0: i32) -> (i32, i32) {
    %c0_i32 = arith.constant 0 : i32
    %c0_i32_0 = arith.constant 0 : i32
    %c0_i32_1 = arith.constant 0 : i32
    return %c0_i32, %c0_i32_0 : i32, i32
  }
  func.func @transform_3(%arg0: i32) -> (i32, i32) {
    %c0_i32 = arith.constant 0 : i32
    %c0_i32_0 = arith.constant 0 : i32
    %c0_i32_1 = arith.constant 0 : i32
    return %c0_i32, %c0_i32_0 : i32, i32
  }
  func.func @transform_4(%arg0: i32) -> (i32, i32) {
    %c0_i32 = arith.constant 0 : i32
    %c0_i32_0 = arith.constant 0 : i32
    %c0_i32_1 = arith.constant 0 : i32
    return %c0_i32, %c0_i32_0 : i32, i32
  }
  func.func @transform_5(%arg0: i32) -> (i32, i32) {
    %c0_i32 = arith.constant 0 : i32
    %c0_i32_0 = arith.constant 0 : i32
    %c0_i32_1 = arith.constant 0 : i32
    return %c0_i32, %c0_i32_0 : i32, i32
  }
  func.func @transform_6(%arg0: i32) -> (i32, i32) {
    %c0_i32 = arith.constant 0 : i32
    %c0_i32_0 = arith.constant 0 : i32
    %c0_i32_1 = arith.constant 0 : i32
    return %c0_i32, %c0_i32_0 : i32, i32
  }
  func.func @transform_7(%arg0: i32) -> (i32, i32) {
    %c0_i32 = arith.constant 0 : i32
    %c0_i32_0 = arith.constant 0 : i32
    %c0_i32_1 = arith.constant 0 : i32
    return %c0_i32, %c0_i32_0 : i32, i32
  }
  func.func @transform_8(%arg0: i32) -> (i32, i32) {
    %c0_i32 = arith.constant 0 : i32
    %c0_i32_0 = arith.constant 0 : i32
    return %arg0, %c0_i32 : i32, i32
  }
}

</mosaic_0001>

<bundles_post_ra>
// kernel: tpu_custom_call.1
= control target key start
LH: loop header
LB: loop body
LE: loop exit
PB: predicated region body
PF: predicated region fallthrough
CT: control target
= control target key end

     0   :  { %v497_v4 = vmov 0.0   ;;  %s498_s17 = smov 32   ;;  %s499_s24 = smov 96   ;;  %vm51_vm0 = vcmask 261120   ;;  %s717_s0 = inlined_call_operand.vmem [shape: f32[16,32], index: 0, kind: input, shape index: {}]   ;;  %s718_s1 = inlined_call_operand.vmem [shape: f32[16,32], index: 1, kind: input, shape index: {}]   ;;  %s719_s2 = inlined_call_operand.vmem [shape: f32[32,256], index: 2, kind: input, shape index: {}]   ;;  %s720_s3 = inlined_call_operand.vmem [shape: f32[1,256], index: 3, kind: input, shape index: {}]   ;;  %s721_s4 = inlined_call_operand.vmem [shape: f32[32,8], index: 4, kind: input, shape index: {}]   ;;  %s722_s5 = inlined_call_operand.vmem [shape: f32[256,8], index: 5, kind: input, shape index: {}]   ;;  %s723_s6 = inlined_call_operand.vmem [shape: f32[1,8], index: 6, kind: input, shape index: {}]   ;;  %s724_s7 = inlined_call_operand.hbm [shape: f32[8,16], index: 7, kind: output, shape index: {}]  }
   0x1   :  { %v38_v0 = vld [vmem:[%s719_s2 + $0x38] sm:$0xff]  ;;  %v37_v1 = vld [vmem:[%s719_s2 + $0x30] sm:$0xff]  ;;  %v36_v2 = vld [vmem:[%s719_s2 + $0x28] sm:$0xff]  ;;  %122 = vmatprep.mubr.f32.mxu1 %v497_v4 }
   0x2   :  { %82 = vmatprep.subr.mxu1 %v38_v0  ;;  %v35_v3 = vld [vmem:[%s719_s2 + $0x20] sm:$0xff]  ;;  %v34_v5 = vld [vmem:[%s719_s2 + $0x18] sm:$0xff]  ;;  %v33_v6 = vld [vmem:[%s719_s2 + $0x10] sm:$0xff] }
   0x3   :  { %83 = vmatpush1.msra.mxu1 %v37_v1  ;;  %v563_v7 = vld [vmem:[%s718_s1] sm:$0xff]  ;;  %v32_v8 = vld [vmem:[%s719_s2 + $0x8] sm:$0xff]  ;;  %v198_v9 = vld [vmem:[%s722_s5 + $0xf8] sm:$0xff] }
   0x4   :  { %84 = vmatprep.subr.mxu1 %v36_v2  ;;  %137 = vrot.lane.b32.xlu0 %v563_v7, %s498_s17  ;;  %v182_v10 = vld [vmem:[%s722_s5 + $0x78] sm:$0xff]  ;;  %v31_v11 = vld [vmem:[%s719_s2] sm:$0xff]  ;;  %v585_v13 = vld [vmem:[%s718_s1 + $0x8] sm:$0xff]  ;;  %s500_s2 = smov 64  }
   0x5   :  { %85 = vmatpush1.msra.mxu1 %v35_v3  ;;  %149 = vrot.lane.b32.xlu1 %v563_v7, %s499_s24  ;;  %v27_v12 = vld [vmem:[%s717_s0] sm:$0xff]  ;;  %v197_v14 = vld [vmem:[%s722_s5 + $0xf0] sm:$0xff]  ;;  %v196_v16 = vld [vmem:[%s722_s5 + $0xe8] sm:$0xff] }
   0x6   :  { %86 = vmatprep.subr.mxu1 %v34_v5  ;;  %421 = vmatprep.subr.mxu0 %v198_v9  ;;  %v181_v15 = vld [vmem:[%s722_s5 + $0x70] sm:$0xff]  ;;  %v602_v17 = vld [vmem:[%s717_s0 + $0x8] sm:$0xff]  ;;  %v195_v19 = vld [vmem:[%s722_s5 + $0xe0] sm:$0xff] }
   0x7   :  { %87 = vmatpush1.msra.mxu1 %v33_v6  ;;  %422 = vmatpush3.msra.mxu0 %v182_v10  ;;  %v180_v18 = vld [vmem:[%s722_s5 + $0x68] sm:$0xff] }
   0x8   :  { %88 = vmatprep.subr.mxu1 %v32_v8  ;;  %143 = vrot.lane.b32.xlu0 %v563_v7, %s500_s2 }
   0x9   :  { %89 = vmatpush1.msra.mxu1 %v31_v11  ;;  %139 = vrot.lane.b32.xlu1 %v585_v13, %s498_s17 }
   0xa   :  { %410 = vmatmul.mubr.msk.f32.vlgmr.msra.gmra.mxu1 %vm51_vm0, %v27_v12  ;;  %423 = vmatprep.subr.mxu0 %v197_v14 }
   0xb   :  { %128 = vmatprep.mubr.f32.mxu1 %v497_v4  ;;  %424 = vmatpush3.msra.mxu0 %v181_v15 }
   0xc   :  { %145 = vrot.lane.b32.xlu0 %v585_v13, %s500_s2  ;;  %425 = vmatprep.subr.mxu0 %v196_v16 }
   0xd   :  { %12 = vsyncpa [#allocation3], 0  ;;  %151 = vrot.lane.b32.xlu1 %v585_v13, %s499_s24  ;;  %v179_v20 = vld [vmem:[%s722_s5 + $0x60] sm:$0xff]  ;;  %426 = vmatpush3.msra.mxu0 %v180_v18  ;;  %v194_v21 = vld [vmem:[%s722_s5 + $0xd8] sm:$0xff]  ;;  %v41_v49 = vlaneseq  ;;  %vm157_vm1 = vcmask 523264   ;;  %vm160_vm2 = vcmask 785408  }
   0xe   :  { %411 = vmatmul.mubr.msk.f32.gmra.mxu1 %vm51_vm0, %v602_v17  ;;  %427 = vmatprep.subr.mxu0 %v195_v19  ;;  %v178_v22 = vld [vmem:[%s722_s5 + $0x58] sm:$0xff]  ;;  %v193_v23 = vld [vmem:[%s722_s5 + $0xd0] sm:$0xff]  ;;  %v192_v25 = vld [vmem:[%s722_s5 + $0xc8] sm:$0xff]  ;;  %s501_s23 = smov [#allocation2]   ;;  %vm394_vm3 = vcmask 130048  }
   0xf   :  { %467 = vmatprep.mubr.msk.f32.mxu1 %vm51_vm0, %v27_v12  ;;  %428 = vmatpush3.msra.mxu0 %v179_v20  ;;  %v177_v24 = vld [vmem:[%s722_s5 + $0x50] sm:$0xff]  ;;  %v176_v26 = vld [vmem:[%s722_s5 + $0x48] sm:$0xff]  ;;  %v191_v27 = vld [vmem:[%s722_s5 + $0xc0] sm:$0xff]  ;;  %v42_v50 = vshrl.u32 %v41_v49, 7  ;;  %s402_s24 = sshll.u32 %s501_s23, 4  ;;  %s403_s24 = int_to_ptr.vmem [resolvable:$true] %s402_s24 }
  0x10   :  { %429 = vmatprep.subr.mxu0 %v194_v21  ;;  %v175_v28 = vld [vmem:[%s722_s5 + $0x40] sm:$0xff]  ;;  %v190_v29 = vld [vmem:[%s722_s5 + $0xb8] sm:$0xff]  ;;  %v189_v31 = vld [vmem:[%s722_s5 + $0xb0] sm:$0xff]  ;;  %s475_s25 = scalar_lea.vmem %s403_s24, 128  ;;  %p480_p1 = scmp.lt.s32.totalorder %s403_s24, %s403_s24 }
  0x11   :  { %430 = vmatpush3.msra.mxu0 %v178_v22  ;;  %v174_v30 = vld [vmem:[%s722_s5 + $0x38] sm:$0xff]  ;;  %v173_v32 = vld [vmem:[%s722_s5 + $0x30] sm:$0xff]  ;;  %v188_v33 = vld [vmem:[%s722_s5 + $0xa8] sm:$0xff]  ;;  %v43_v53 = vsub.s32 0, %v42_v50  ;;  %v47_v55 = vsub.s32 1, %v42_v50  ;;  %p476_p0 = scmp.ne.s32.totalorder %s403_s24, %s475_s25  ;;  %p481_p2 = scmp.lt.s32.totalorder %s475_s25, %s475_s25 }
  0x12   :  { %431 = vmatprep.subr.mxu0 %v193_v23  ;;  %v172_v34 = vld [vmem:[%s722_s5 + $0x28] sm:$0xff]  ;;  %v187_v35 = vld [vmem:[%s722_s5 + $0xa0] sm:$0xff]  ;;  %v202_v37 = vld [vmem:[%s721_s4 + $0x18] sm:$0xff] }
  0x13   :  { %432 = vmatpush3.msra.mxu0 %v177_v24  ;;  %v171_v36 = vld [vmem:[%s722_s5 + $0x20] sm:$0xff]  ;;  %v186_v38 = vld [vmem:[%s722_s5 + $0x98] sm:$0xff]  ;;  %459 = vmatprep.subr.mxu1 %v202_v37  ;;  %v201_v40 = vld [vmem:[%s721_s4 + $0x10] sm:$0xff]  ;;  %p482_p3 = por %p481_p2, %p480_p1 }
  0x14   :  { %433 = vmatprep.subr.mxu0 %v192_v25  ;;  %v170_v39 = vld [vmem:[%s722_s5 + $0x18] sm:$0xff]  ;;  %460 = vmatpush3.msra.mxu1 %v202_v37  ;;  %v185_v41 = vld [vmem:[%s722_s5 + $0x90] sm:$0xff]  ;;  %v184_v43 = vld [vmem:[%s722_s5 + $0x88] sm:$0xff] }
  0x15   :  { %434 = vmatpush3.msra.mxu0 %v176_v26  ;;  %461 = vmatprep.subr.mxu1 %v201_v40  ;;  %v169_v42 = vld [vmem:[%s722_s5 + $0x10] sm:$0xff]  ;;  %v200_v44 = vld [vmem:[%s721_s4 + $0x8] sm:$0xff]  ;;  %v199_v46 = vld [vmem:[%s721_s4] sm:$0xff]  ;;  %p483_p4 = pnand %p482_p3, %p476_p0 }
  0x16   :  { %435 = vmatprep.subr.mxu0 %v191_v27  ;;  %462 = vmatpush3.msra.mxu1 %v201_v40  ;;  %v168_v45 = vld [vmem:[%s722_s5 + $0x8] sm:$0xff]  ;;  %v183_v47 = vld [vmem:[%s722_s5 + $0x80] sm:$0xff] }
  0x17   :  { %436 = vmatpush3.msra.mxu0 %v175_v28  ;;  %463 = vmatprep.subr.mxu1 %v200_v44  ;;  %v167_v48 = vld [vmem:[%s722_s5] sm:$0xff] }
  0x18   :  { %437 = vmatprep.subr.mxu0 %v190_v29  ;;  %464 = vmatpush3.msra.mxu1 %v200_v44  ;;  %v39_v54 = vld [vmem:[%s720_s3] sm:$0x3] }
  0x19   :  { %438 = vmatpush3.msra.mxu0 %v174_v30  ;;  %465 = vmatprep.subr.mxu1 %v199_v46  ;;  %v44_v58 = vrot.slane %v39_v54, %v43_v53  ;;  %v48_v60 = vrot.slane %v39_v54, %v47_v55  ;;  %v414_v22 = vld [vmem:[%s723_s6] ss:$0 sm:$0xff] }
  0x1a   :  { %439 = vmatprep.subr.mxu0 %v189_v31  ;;  %466 = vmatpush3.msra.mxu1 %v199_v46 }
  0x1b   :  { %440 = vmatpush3.msra.mxu0 %v173_v32  ;;  %468 = vmatmul.mubr.msk.f32.vlgmr.msra.gmra.mxu1 %vm51_vm0, %v602_v17 }
  0x1c   :  { %441 = vmatprep.subr.mxu0 %v188_v33 }
  0x1d   :  { %442 = vmatpush3.msra.mxu0 %v172_v34 }
  0x1e   :  { %443 = vmatprep.subr.mxu0 %v187_v35 }
  0x1f   :  { %444 = vmatpush3.msra.mxu0 %v171_v36 }
  0x20   :  { %445 = vmatprep.subr.mxu0 %v186_v38 }
  0x21   :  { %446 = vmatpush3.msra.mxu0 %v170_v39 }
  0x22   :  { %447 = vmatprep.subr.mxu0 %v185_v41 }
  0x23   :  { %448 = vmatpush3.msra.mxu0 %v169_v42 }
  0x24   :  { %449 = vmatprep.subr.mxu0 %v184_v43 }
  0x25   :  { %450 = vmatpush3.msra.mxu0 %v168_v45 }
  0x26   :  { %451 = vmatprep.subr.mxu0 %v183_v47 }
  0x27   :  { %452 = vmatpush3.msra.mxu0 %v167_v48 }
  0x76   :  { %v138_v51 = vpop.permute.xlu0 %137 }
  0x77   :  { %v150_v52 = vpop.permute.xlu1 %149  ;;  %v155_v57 = vsel %vm51_vm0, %v563_v7, %v138_v51 }
  0x7a   :  { %v144_v56 = vpop.permute.xlu0 %143 }
  0x7b   :  { %v140_v59 = vpop.permute.xlu1 %139  ;;  %v158_v62 = vsel %vm157_vm1, %v155_v57, %v144_v56 }
  0x7c   :  { %v156_v63 = vsel %vm51_vm0, %v585_v13, %v140_v59  ;;  %v161_v8 = vsel %vm160_vm2, %v158_v62, %v150_v52 }
  0x7e   :  { %v146_v0 = vpop.permute.xlu0 %145 }
  0x7f   :  { %v159_v4 = vsel %vm157_vm1, %v156_v63, %v146_v0  ;;  %v152_v6 = vpop.permute.xlu1 %151 }
  0x80   :  { %v162_v12 = vsel %vm160_vm2, %v159_v4, %v152_v6 }
  0xca   :  { %v124_v61 = vpop.f32.mrf.mxu1 }
  0xcb   :  { %v125_v1 = vadd.f32 %v124_v61, %v44_v58 }
  0xcc   :  { %v126_v2 = vpop.f32.mrf.mxu1 }
  0xcd   :  { %v127_v3 = vadd.f32 %v126_v2, %v48_v60  ;;  %v163_v11 = vmul.f32 %v161_v8, %v125_v1 }
  0xce   :  { %v130_v5 = vpop.f32.mrf.mxu1 }
  0xcf   :  { %v164_v9 = vmul.f32 %v161_v8, %v127_v3  ;;  %v131_v7 = vadd.f32 %v130_v5, %v44_v58 }
  0xd0   :  { %v132_v10 = vpop.f32.mrf.mxu1 }
  0xd1   :  { %v133_v14 = vadd.f32 %v132_v10, %v48_v60  ;;  %342 = vmatprep.mubr.f32.mxu0 %v164_v9  ;;  %v165_v16 = vmul.f32 %v162_v12, %v131_v7 }
  0xd2   :  { %343 = vmatmul.mubr.f32.vlgmr.msra.gmra.mxu0 %v163_v11 }
  0xd3   :  { %v166_v15 = vmul.f32 %v162_v12, %v133_v14 }
  0xd5   :  { %347 = vmatprep.mubr.f32.mxu0 %v166_v15 }
  0xd6   :  { %348 = vmatmul.mubr.f32.gmra.mxu0 %v165_v16 }
  0xdb   :  { %v469_v13 = vpop.f32.mrf.mxu1 }
  0xdd   :  { %v269_v20 = vpop.f32.mrf.mxu1 }
 0x192   :  { %v453_v17 = vpop.f32.mrf.mxu0 }
 0x194   :  { %v454_v18 = vpop.f32.mrf.mxu0 }
 0x195   :  { %v455_v19 = vadd.f32 %v454_v18, %v453_v17 }
 0x196   :  { %v456_v21 = vpop.f32.mrf.mxu0 }
 0x197   :  { %v345_v23 = vadd.f32 %v455_v19, %v269_v20 }
 0x198   :  { %v457_v24 = vpop.f32.mrf.mxu0 }
 0x199   :  { %v458_v25 = vadd.f32 %v457_v24, %v456_v21  ;;  %v360_v26 = vadd.f32 %v414_v22, %v345_v23 }
 0x19b   :  { %v350_v27 = vadd.f32 %v469_v13, %v458_v25  ;;  %362 = vxpose.xlu0.b32.start [1/2] (short) (narrow) %v360_v26, 8 }
 0x19d   :  { %v361_v28 = vadd.f32 %v414_v22, %v350_v27 }
 0x19f   :  { %363 = vxpose.xlu0.b32.end [2/2] (short) (narrow) %v361_v28, 8 }
 0x217   :  { %v378_v29 = vpop.trf.xlu0 }
 0x218   :  { %395 = vst.msk [vmem:[#allocation2] sm:$0xff] %vm394_vm3, %v378_v29 }
 0x219   :  { %486 = shalt.err (!%p483_p4)
}
 0x21a   :  { %405 = dma.vmem_to_hbm [thread:$0]  %s403_s24, 128, %s724_s7, [#allocation3]  }
 0x21b   :  { %495 = dma.done.wait [#allocation3], 128  }
 0x21c   :  { %496 = vsyncadd [#allocation3], 4294967168 }
 0x21d   :  { %409 = vsyncpa [#allocation3], 1 }

// kernel: tpu_custom_call.1
= control target key start
LH: loop header
LB: loop body
LE: loop exit
PB: predicated region body
PF: predicated region fallthrough
CT: control target
= control target key end

     0   :  { %v497_v3 = vmov 0.0   ;;  %vm51_vm0 = vcmask 261120   ;;  %v41_v57 = vlaneseq  ;;  %vm427_vm1 = vcmask 64512   ;;  %s733_s2 = inlined_call_operand.vmem [shape: f32[32,256], index: 2, kind: input, shape index: {}]   ;;  %s734_s0 = inlined_call_operand.vmem [shape: f32[16,32], index: 0, kind: input, shape index: {}]   ;;  %s735_s5 = inlined_call_operand.vmem [shape: f32[32,256], index: 5, kind: input, shape index: {}]   ;;  %s736_s6 = inlined_call_operand.vmem [shape: f32[256,8], index: 6, kind: input, shape index: {}]   ;;  %s737_s1 = inlined_call_operand.vmem [shape: f32[16,32], index: 1, kind: input, shape index: {}]   ;;  %s738_s4 = inlined_call_operand.vmem [shape: f32[32,8], index: 4, kind: input, shape index: {}]   ;;  %s739_s3 = inlined_call_operand.vmem [shape: f32[1,256], index: 3, kind: input, shape index: {}]   ;;  %s740_s7 = inlined_call_operand.vmem [shape: f32[1,8], index: 7, kind: input, shape index: {}]   ;;  %s741_s8 = inlined_call_operand.vmem [shape: f32[16,8], index: 8, kind: output, shape index: {}]  }
   0x1   :  { %v38_v0 = vld [vmem:[%s733_s2 + $0x38] sm:$0xff]  ;;  %v37_v1 = vld [vmem:[%s733_s2 + $0x30] sm:$0xff]  ;;  %v36_v2 = vld [vmem:[%s733_s2 + $0x28] sm:$0xff]  ;;  %122 = vmatprep.mubr.f32.mxu0 %v497_v3 }
   0x2   :  { %82 = vmatprep.subr.mxu0 %v38_v0  ;;  %v35_v4 = vld [vmem:[%s733_s2 + $0x20] sm:$0xff]  ;;  %v34_v5 = vld [vmem:[%s733_s2 + $0x18] sm:$0xff]  ;;  %v33_v6 = vld [vmem:[%s733_s2 + $0x10] sm:$0xff]  ;;  %v42_v58 = vshrl.u32 %v41_v57, 7 }
   0x3   :  { %83 = vmatpush1.msra.mxu0 %v37_v1  ;;  %v32_v7 = vld [vmem:[%s733_s2 + $0x8] sm:$0xff]  ;;  %v31_v8 = vld [vmem:[%s733_s2] sm:$0xff]  ;;  %v144_v10 = vld [vmem:[%s735_s5 + $0x38] sm:$0xff] }
   0x4   :  { %84 = vmatprep.subr.mxu0 %v36_v2  ;;  %v29_v9 = vld [vmem:[%s734_s0] sm:$0xff]  ;;  %v263_v11 = vld [vmem:[%s736_s6 + $0xf8] sm:$0xff]  ;;  %v143_v12 = vld [vmem:[%s735_s5 + $0x30] sm:$0xff]  ;;  %v47_v60 = vsub.s32 1, %v42_v58  ;;  %v43_v61 = vsub.s32 0, %v42_v58 }
   0x5   :  { %85 = vmatpush1.msra.mxu0 %v35_v4  ;;  %447 = vmatprep.subr.mxu1 %v263_v11  ;;  %v247_v13 = vld [vmem:[%s736_s6 + $0x78] sm:$0xff]  ;;  %v142_v14 = vld [vmem:[%s735_s5 + $0x28] sm:$0xff]  ;;  %v262_v15 = vld [vmem:[%s736_s6 + $0xf0] sm:$0xff] }
   0x6   :  { %86 = vmatprep.subr.mxu0 %v34_v5  ;;  %448 = vmatpush3.msra.mxu1 %v247_v13  ;;  %v141_v16 = vld [vmem:[%s735_s5 + $0x20] sm:$0xff]  ;;  %v246_v17 = vld [vmem:[%s736_s6 + $0x70] sm:$0xff]  ;;  %v598_v18 = vld [vmem:[%s734_s0 + $0x8] sm:$0xff] }
   0x7   :  { %87 = vmatpush1.msra.mxu0 %v33_v6  ;;  %v140_v19 = vld [vmem:[%s735_s5 + $0x18] sm:$0xff]  ;;  %v139_v20 = vld [vmem:[%s735_s5 + $0x10] sm:$0xff]  ;;  %449 = vmatprep.subr.mxu1 %v262_v15  ;;  %v138_v21 = vld [vmem:[%s735_s5 + $0x8] sm:$0xff] }
   0x8   :  { %88 = vmatprep.subr.mxu0 %v32_v7  ;;  %450 = vmatpush3.msra.mxu1 %v246_v17  ;;  %v261_v22 = vld [vmem:[%s736_s6 + $0xe8] sm:$0xff]  ;;  %v137_v23 = vld [vmem:[%s735_s5] sm:$0xff]  ;;  %v259_v28 = vld [vmem:[%s736_s6 + $0xd8] sm:$0xff] }
   0x9   :  { %89 = vmatpush1.msra.mxu0 %v31_v8  ;;  %v245_v24 = vld [vmem:[%s736_s6 + $0x68] sm:$0xff]  ;;  %v135_v25 = vld [vmem:[%s737_s1] sm:$0xff]  ;;  %451 = vmatprep.subr.mxu1 %v261_v22  ;;  %v243_v29 = vld [vmem:[%s736_s6 + $0x58] sm:$0xff] }
   0xa   :  { %434 = vmatmul.mubr.msk.f32.vlgmr.msra.gmra.mxu0 %vm51_vm0, %v29_v9  ;;  %175 = vmatprep.subr.mxu0 %v144_v10  ;;  %v260_v26 = vld [vmem:[%s736_s6 + $0xe0] sm:$0xff]  ;;  %v136_v30 = vld [vmem:[%s737_s1 + $0x8] sm:$0xff]  ;;  %v258_v31 = vld [vmem:[%s736_s6 + $0xd0] sm:$0xff] }
   0xb   :  { %176 = vmatpush1.msra.mxu0 %v143_v12  ;;  %128 = vmatprep.mubr.f32.mxu0 %v497_v3  ;;  %v244_v27 = vld [vmem:[%s736_s6 + $0x60] sm:$0xff]  ;;  %v242_v32 = vld [vmem:[%s736_s6 + $0x50] sm:$0xff]  ;;  %v257_v33 = vld [vmem:[%s736_s6 + $0xc8] sm:$0xff] }
   0xc   :  { %177 = vmatprep.subr.mxu0 %v142_v14  ;;  %452 = vmatpush3.msra.mxu1 %v245_v24  ;;  %v241_v34 = vld [vmem:[%s736_s6 + $0x48] sm:$0xff]  ;;  %v256_v35 = vld [vmem:[%s736_s6 + $0xc0] sm:$0xff]  ;;  %v255_v37 = vld [vmem:[%s736_s6 + $0xb8] sm:$0xff] }
   0xd   :  { %178 = vmatpush1.msra.mxu0 %v141_v16  ;;  %453 = vmatprep.subr.mxu1 %v260_v26  ;;  %v240_v36 = vld [vmem:[%s736_s6 + $0x40] sm:$0xff]  ;;  %v239_v38 = vld [vmem:[%s736_s6 + $0x38] sm:$0xff]  ;;  %v254_v39 = vld [vmem:[%s736_s6 + $0xb0] sm:$0xff] }
   0xe   :  { %435 = vmatmul.mubr.msk.f32.gmra.mxu0 %vm51_vm0, %v598_v18  ;;  %179 = vmatprep.subr.mxu0 %v140_v19  ;;  %v238_v40 = vld [vmem:[%s736_s6 + $0x30] sm:$0xff]  ;;  %v253_v41 = vld [vmem:[%s736_s6 + $0xa8] sm:$0xff]  ;;  %v252_v43 = vld [vmem:[%s736_s6 + $0xa0] sm:$0xff] }
   0xf   :  { %180 = vmatpush1.msra.mxu0 %v139_v20  ;;  %215 = vmatprep.mubr.f32.mxu0 %v497_v3  ;;  %v237_v42 = vld [vmem:[%s736_s6 + $0x28] sm:$0xff]  ;;  %v236_v44 = vld [vmem:[%s736_s6 + $0x20] sm:$0xff]  ;;  %v251_v45 = vld [vmem:[%s736_s6 + $0x98] sm:$0xff] }
  0x10   :  { %181 = vmatprep.subr.mxu0 %v138_v21  ;;  %454 = vmatpush3.msra.mxu1 %v244_v27  ;;  %v235_v46 = vld [vmem:[%s736_s6 + $0x18] sm:$0xff]  ;;  %v250_v48 = vld [vmem:[%s736_s6 + $0x90] sm:$0xff]  ;;  %v249_v51 = vld [vmem:[%s736_s6 + $0x88] sm:$0xff] }
  0x11   :  { %182 = vmatpush1.msra.mxu0 %v137_v23  ;;  %455 = vmatprep.subr.mxu1 %v259_v28  ;;  %v267_v47 = vld [vmem:[%s738_s4 + $0x18] sm:$0xff]  ;;  %v234_v49 = vld [vmem:[%s736_s6 + $0x10] sm:$0xff]  ;;  %v233_v52 = vld [vmem:[%s736_s6 + $0x8] sm:$0xff] }
  0x12   :  { %436 = vmatmul.mubr.msk.f32.vlgmr.msra.gmra.mxu0 %vm51_vm0, %v135_v25  ;;  %456 = vmatpush3.msra.mxu1 %v243_v29  ;;  %v266_v50 = vld [vmem:[%s738_s4 + $0x10] sm:$0xff]  ;;  %v265_v53 = vld [vmem:[%s738_s4 + $0x8] sm:$0xff]  ;;  %v248_v54 = vld [vmem:[%s736_s6 + $0x80] sm:$0xff] }
  0x13   :  { %221 = vmatprep.mubr.f32.mxu0 %v497_v3  ;;  %457 = vmatprep.subr.mxu1 %v258_v31  ;;  %v232_v55 = vld [vmem:[%s736_s6] sm:$0xff] }
  0x14   :  { %458 = vmatpush3.msra.mxu1 %v242_v32  ;;  %485 = vmatprep.subr.mxu0 %v267_v47  ;;  %v264_v56 = vld [vmem:[%s738_s4] sm:$0xff] }
  0x15   :  { %459 = vmatprep.subr.mxu1 %v257_v33  ;;  %486 = vmatpush3.msra.mxu0 %v267_v47  ;;  %v39_v63 = vld [vmem:[%s739_s3] sm:$0x3] }
  0x16   :  { %437 = vmatmul.mubr.msk.f32.gmra.mxu0 %vm51_vm0, %v136_v30  ;;  %460 = vmatpush3.msra.mxu1 %v241_v34  ;;  %v48_v1 = vrot.slane %v39_v63, %v47_v60  ;;  %v44_v2 = vrot.slane %v39_v63, %v43_v61  ;;  %v440_v21 = vld [vmem:[%s740_s7] ss:$0 sm:$0xff] }
  0x17   :  { %493 = vmatprep.mubr.msk.f32.mxu0 %vm51_vm0, %v29_v9  ;;  %461 = vmatprep.subr.mxu1 %v256_v35 }
  0x18   :  { %462 = vmatpush3.msra.mxu1 %v240_v36  ;;  %487 = vmatprep.subr.mxu0 %v266_v50 }
  0x19   :  { %463 = vmatprep.subr.mxu1 %v255_v37  ;;  %488 = vmatpush3.msra.mxu0 %v266_v50 }
  0x1a   :  { %464 = vmatpush3.msra.mxu1 %v239_v38  ;;  %489 = vmatprep.subr.mxu0 %v265_v53 }
  0x1b   :  { %465 = vmatprep.subr.mxu1 %v254_v39  ;;  %490 = vmatpush3.msra.mxu0 %v265_v53 }
  0x1c   :  { %466 = vmatpush3.msra.mxu1 %v238_v40  ;;  %491 = vmatprep.subr.mxu0 %v264_v56 }
  0x1d   :  { %467 = vmatprep.subr.mxu1 %v253_v41  ;;  %492 = vmatpush3.msra.mxu0 %v264_v56 }
  0x1e   :  { %468 = vmatpush3.msra.mxu1 %v237_v42  ;;  %494 = vmatmul.mubr.msk.f32.vlgmr.msra.gmra.mxu0 %vm51_vm0, %v598_v18 }
  0x1f   :  { %469 = vmatprep.subr.mxu1 %v252_v43 }
  0x20   :  { %470 = vmatpush3.msra.mxu1 %v236_v44 }
  0x21   :  { %471 = vmatprep.subr.mxu1 %v251_v45 }
  0x22   :  { %472 = vmatpush3.msra.mxu1 %v235_v46 }
  0x23   :  { %473 = vmatprep.subr.mxu1 %v250_v48 }
  0x24   :  { %474 = vmatpush3.msra.mxu1 %v234_v49 }
  0x25   :  { %475 = vmatprep.subr.mxu1 %v249_v51 }
  0x26   :  { %476 = vmatpush3.msra.mxu1 %v233_v52 }
  0x27   :  { %477 = vmatprep.subr.mxu1 %v248_v54 }
  0x28   :  { %478 = vmatpush3.msra.mxu1 %v232_v55 }
  0xca   :  { %v124_v59 = vpop.f32.mrf.mxu0 }
  0xcb   :  { %v125_v6 = vadd.f32 %v124_v59, %v44_v2 }
  0xcc   :  { %v126_v62 = vpop.f32.mrf.mxu0 }
  0xcd   :  { %v127_v5 = vadd.f32 %v126_v62, %v48_v1 }
  0xce   :  { %v130_v0 = vpop.f32.mrf.mxu0 }
  0xcf   :  { %v131_v12 = vadd.f32 %v130_v0, %v44_v2 }
  0xd0   :  { %v132_v3 = vpop.f32.mrf.mxu0 }
  0xd1   :  { %v133_v11 = vadd.f32 %v132_v3, %v48_v1 }
  0xd2   :  { %v217_v4 = vpop.f32.mrf.mxu0 }
  0xd3   :  { %v228_v9 = vmul.f32 %v217_v4, %v125_v6 }
  0xd4   :  { %v219_v7 = vpop.f32.mrf.mxu0 }
  0xd5   :  { %v229_v8 = vmul.f32 %v219_v7, %v127_v5 }
  0xd6   :  { %v223_v10 = vpop.f32.mrf.mxu0 }
  0xd7   :  { %407 = vmatprep.mubr.f32.mxu1 %v229_v8  ;;  %v230_v15 = vmul.f32 %v223_v10, %v131_v12 }
  0xd8   :  { %v225_v13 = vpop.f32.mrf.mxu0  ;;  %408 = vmatmul.mubr.f32.vlgmr.msra.gmra.mxu1 %v228_v9 }
  0xd9   :  { %v231_v14 = vmul.f32 %v225_v13, %v133_v11 }
  0xdb   :  { %412 = vmatprep.mubr.f32.mxu1 %v231_v14 }
  0xdc   :  { %413 = vmatmul.mubr.f32.gmra.mxu1 %v230_v15 }
  0xde   :  { %v495_v16 = vpop.f32.mrf.mxu0 }
  0xe0   :  { %v334_v19 = vpop.f32.mrf.mxu0 }
 0x198   :  { %v479_v17 = vpop.f32.mrf.mxu1 }
 0x19a   :  { %v480_v18 = vpop.f32.mrf.mxu1 }
 0x19b   :  { %v481_v20 = vadd.f32 %v480_v18, %v479_v17 }
 0x19c   :  { %v482_v22 = vpop.f32.mrf.mxu1 }
 0x19d   :  { %v410_v23 = vadd.f32 %v481_v20, %v334_v19 }
 0x19e   :  { %v483_v24 = vpop.f32.mrf.mxu1 }
 0x19f   :  { %v425_v25 = vadd.f32 %v440_v21, %v410_v23  ;;  %v484_v26 = vadd.f32 %v483_v24, %v482_v22 }
 0x1a1   :  { %428 = vst.msk [vmem:[%s741_s8] sm:$0xff] %vm427_vm1, %v425_v25  ;;  %v415_v27 = vadd.f32 %v495_v16, %v484_v26 }
 0x1a3   :  { %v426_v28 = vadd.f32 %v440_v21, %v415_v27 }
 0x1a5   :  { %429 = vst.msk [vmem:[%s741_s8 + $0x8] sm:$0xff] %vm427_vm1, %v426_v28 }

</bundles_post_ra>
